<compile_context>
chip_gen: v6e
topology: v6e:2x2x1
jax: 0.10.0
libtpu: 0.0.40
codegen_flags: <defaults>
</compile_context>

<pallas_src>
import jax
import jax.numpy as jnp
from jax.experimental import pallas as pl
from jax.experimental.pallas import tpu as pltpu

# ----------------------------- sizes ---------------------------------------
B = 16       # molecules (batch)
A = 8        # atoms per molecule
F_IN = 16    # input per-atom feature dim
H = 32       # representation feature dim
H2 = 16      # output-head hidden dim
N_HEADS = 2  # number of Atomwise output modules

# Row tiling: whole molecules per tile so per-molecule atom sums are tile-local.
TM_TILE = 8                  # molecules per grid step
TA_TILE = TM_TILE * A        # atom rows per grid step (64)
GRID = B // TM_TILE          # grid steps (2) -> "parallel" for v7x's 2 TCs

# Packed-weight slab layout (static row offsets, one DMA, stays resident).
PACK_COLS = max(H, N_HEADS * H2)          # 32 lanes
R_W1 = 0                                  # (F_IN, H)
R_W2 = R_W1 + F_IN                        # (H, H)
R_WH1 = R_W2 + H                          # (H, 2*H2)   fused head layer 1
R_W2F = R_WH1 + H                         # (2*H2, PACK_COLS) block-diag head layer 2
R_B1 = R_W2F + N_HEADS * H2               # (1, H)
R_B2 = R_B1 + 1                           # (1, H)
R_BH1 = R_B2 + 1                          # (1, 2*H2)
R_BH2 = R_BH1 + 1                         # (1, PACK_COLS)  per-atom bias * A
PACK_ROWS = ((R_BH2 + 1 + 7) // 8) * 8    # 120 (sublane-aligned)

assert B % TM_TILE == 0
assert TA_TILE % 8 == 0
assert H == PACK_COLS and N_HEADS * H2 == PACK_COLS  # full-width slab slices

_LOG2 = 0.6931471805599453


def shifted_softplus(x):
    # SchNet activation: log(0.5*e^x + 0.5) = softplus(x) - log(2)
    return jax.nn.softplus(x) - _LOG2


# ----------------------------- kernel ---------------------------------------
def atomistic_kernel(x_ref, w_ref, rep_ref, e_ref):
    # x_ref : (TA_TILE, F_IN)   atom rows of TM_TILE whole molecules
    # w_ref : (PACK_ROWS, PACK_COLS) packed weights/biases (grid-invariant)
    # rep_ref: (TA_TILE, H)     per-atom representation output
    # e_ref : (TM_TILE, N_HEADS) per-molecule energies for both heads
    x = x_ref[...]

    w1 = w_ref[R_W1:R_W1 + F_IN, :]                # (F_IN, H)
    w2 = w_ref[R_W2:R_W2 + H, :]                   # (H, H)
    wh1 = w_ref[R_WH1:R_WH1 + H, :]                # (H, 2*H2)
    w2f = w_ref[R_W2F:R_W2F + N_HEADS * H2, :]     # (2*H2, PACK_COLS), cols>=N_HEADS are 0
    b1 = w_ref[R_B1:R_B1 + 1, :]                   # (1, H)
    b2 = w_ref[R_B2:R_B2 + 1, :]                   # (1, H)
    bh1 = w_ref[R_BH1:R_BH1 + 1, :]                # (1, 2*H2)
    bh2 = w_ref[R_BH2:R_BH2 + 1, :]                # (1, PACK_COLS), per-atom bias * A

    # --- representation: atom-wise MLP on all tile rows at once ---
    h = shifted_softplus(
        jnp.dot(x, w1, preferred_element_type=jnp.float32) + b1
    )
    rep = shifted_softplus(
        jnp.dot(h, w2, preferred_element_type=jnp.float32) + b2
    )
    rep_ref[...] = rep.astype(rep_ref.dtype)

    # --- fused output heads: one matmul + one ssp for both heads ---
    o = shifted_softplus(
        jnp.dot(rep, wh1, preferred_element_type=jnp.float32) + bh1
    )                                              # (TA_TILE, 2*H2)
    # per-molecule atom sum: sublane reduce instead of a dense summation matmul
    osum = jnp.sum(o.reshape(TM_TILE, A, N_HEADS * H2), axis=1)   # (TM_TILE, 2*H2)
    # H2 -> 1 projection of both heads via block-diagonal weight; per-atom bias
    # already folded as A * bias into bh2.
    e = jnp.dot(osum, w2f, preferred_element_type=jnp.float32) + bh2  # (TM_TILE, PACK_COLS)
    e_ref[...] = e[:, :N_HEADS].astype(e_ref.dtype)


# ----------------------------- one-time parameter packing -------------------
def pack_params(params):
    """Fuse the two Atomwise heads and pack every weight/bias into one slab.

    Runs ONCE outside the jitted forward (these are not constant-folded when
    passed as traced params), so the per-call path sees a single pre-padded
    (PACK_ROWS, PACK_COLS) f32 array -> one DMA, one VMEM buffer.
    """
    (w1, b1, w2, b2, woa1, boa1, woa2, boa2, wob1, bob1, wob2, bob2) = params

    wh1 = jnp.concatenate([woa1, wob1], axis=1)               # (H, 2*H2)
    bh1 = jnp.concatenate([boa1, bob1], axis=1)               # (1, 2*H2)

    w2f = jnp.zeros((N_HEADS * H2, PACK_COLS), jnp.float32)   # block-diag head-2 weights
    w2f = w2f.at[:H2, 0].set(woa2[0])
    w2f = w2f.at[H2:, 1].set(wob2[0])

    bh2 = jnp.zeros((1, PACK_COLS), jnp.float32)              # per-atom bias * A
    bh2 = bh2.at[0, 0].set(float(A) * boa2[0, 0])
    bh2 = bh2.at[0, 1].set(float(A) * bob2[0, 0])

    def padc(m):  # pad columns to PACK_COLS lanes
        return jnp.pad(m.astype(jnp.float32), ((0, 0), (0, PACK_COLS - m.shape[1])))

    slab = jnp.concatenate(
        [padc(w1), padc(w2), padc(wh1), w2f, padc(b1), padc(b2), padc(bh1), bh2],
        axis=0,
    )
    slab = jnp.pad(slab, ((0, PACK_ROWS - slab.shape[0]), (0, 0)))
    return slab


# ----------------------------- wrapper ---------------------------------------
@jax.jit
def atomistic_forward(x, w_slab):
    x2d = x.reshape(B * A, F_IN)   # batch folded onto the sublane/row axis

    rep2d, e = pl.pallas_call(
        atomistic_kernel,
        out_shape=(
            jax.ShapeDtypeStruct((B * A, H), jnp.float32),
            jax.ShapeDtypeStruct((B, N_HEADS), jnp.float32),
        ),
        grid=(GRID,),
        in_specs=[
            pl.BlockSpec((TA_TILE, F_IN), lambda i: (i, 0)),      # row tile
            pl.BlockSpec((PACK_ROWS, PACK_COLS), lambda i: (0, 0)),  # resident weights
        ],
        out_specs=(
            pl.BlockSpec((TA_TILE, H), lambda i: (i, 0)),
            pl.BlockSpec((TM_TILE, N_HEADS), lambda i: (i, 0)),
        ),
        compiler_params=pltpu.CompilerParams(
            dimension_semantics=("parallel",),      # v7x: shard row tiles across 2 TCs
            vmem_limit_bytes=16 * 1024 * 1024,      # tiny footprint; explicit headroom
        ),
    )(x2d, w_slab)

    rep = rep2d.reshape(B, A, H)

    # Mirror AtomisticModel.forward: stash representation, dict over output modules.
    # TODO(synk): requires_dr / autograd-forces branch (inputs[R].requires_grad_) has
    # no in-kernel equivalent; forces would be a separate jax.grad of this wrapper.
    # TODO(synk): variable/padded atom counts need an atom mask folded into the
    # per-molecule sum and the A-scaled bias.
    outputs = {
        "representation": rep,
        "energy_head_a": e[:, 0:1].reshape(B, 1, 1),
        "energy_head_b": e[:, 1:2].reshape(B, 1, 1),
    }
    return outputs


# ----------------------------- reference (plain JAX) --------------------------
def reference_forward(x, params):
    (w1, b1, w2, b2, woa1, boa1, woa2, boa2, wob1, bob1, wob2, bob2) = params
    h = shifted_softplus(jnp.einsum("baf,fh->bah", x, w1) + b1)
    rep = shifted_softplus(jnp.einsum("bah,hk->bak", h, w2) + b2)

    def head(wh1, bh1, wh2_row, bh2):
        o = shifted_softplus(jnp.einsum("bah,hk->bak", rep, wh1) + bh1)
        yi = jnp.sum(o * wh2_row, axis=-1, keepdims=True) + bh2  # (B, A, 1)
        return jnp.sum(yi, axis=1, keepdims=True)                # (B, 1, 1)

    return rep, head(woa1, boa1, woa2, boa2), head(wob1, bob1, wob2, bob2)


# ----------------------------- main ---------------------------------------
if __name__ == "__main__":
    key = jax.random.PRNGKey(0)
    keys = jax.random.split(key, 16)

    def init(k, shape, scale=0.2):
        return (scale * jax.random.normal(k, shape)).astype(jnp.float32)

    w1 = init(keys[0], (F_IN, H))
    b1 = init(keys[1], (1, H))
    w2 = init(keys[2], (H, H))
    b2 = init(keys[3], (1, H))
    woa1 = init(keys[4], (H, H2))
    boa1 = init(keys[5], (1, H2))
    woa2 = init(keys[6], (1, H2))
    boa2 = init(keys[7], (1, 1))
    wob1 = init(keys[8], (H, H2))
    bob1 = init(keys[9], (1, H2))
    wob2 = init(keys[10], (1, H2))
    bob2 = init(keys[11], (1, 1))
    params = (w1, b1, w2, b2, woa1, boa1, woa2, boa2, wob1, bob1, wob2, bob2)

    # per-atom input features (e.g. atom-type embedding concat radial descriptors)
    x = init(keys[12], (B, A, F_IN), scale=1.0)

    # one-time parameter preprocessing (outside the per-call jitted path)
    w_slab = pack_params(params)
    w_slab = jax.block_until_ready(w_slab)

    outs = atomistic_forward(x, w_slab)
    jax.block_until_ready(outs)

    rep_ref, ea_ref_val, eb_ref_val = reference_forward(x, params)
    assert jnp.allclose(outs["representation"], rep_ref, atol=1e-5, rtol=1e-5)
    assert jnp.allclose(outs["energy_head_a"], ea_ref_val, atol=1e-5, rtol=1e-5)
    assert jnp.allclose(outs["energy_head_b"], eb_ref_val, atol=1e-5, rtol=1e-5)

    print("KERNEL_OK")
</pallas_src>

<mosaic_0001>
module attributes {stable_mosaic.version = 11 : i64} {
  func.func @atomistic_kernel(%arg0: i32, %arg1: memref<64x16xf32, #tpu.memory_space<vmem>>, %arg2: memref<120x32xf32, #tpu.memory_space<vmem>>, %arg3: memref<64x32xf32, #tpu.memory_space<vmem>>, %arg4: memref<8x2xf32, #tpu.memory_space<vmem>>) attributes {dimension_semantics = [#tpu.dimension_semantics<parallel>], iteration_bounds = array<i64: 2>, scalar_prefetch = 0 : i64, scratch_operands = 0 : i64, tpu.core_type = #tpu.core_type<tc>, window_params = [{transform_indices = @transform_0, window_bounds = array<i64: 64, 16>}, {pipeline_mode = #tpu.pipeline_mode<synchronous>, transform_indices = @transform_1, window_bounds = array<i64: 120, 32>}, {transform_indices = @transform_2, window_bounds = array<i64: 64, 32>}, {transform_indices = @transform_3, window_bounds = array<i64: 8, 2>}]} {
    %c0 = arith.constant 0 : index
    %c0_0 = arith.constant 0 : index
    %0 = vector.load %arg1[%c0, %c0_0] : memref<64x16xf32, #tpu.memory_space<vmem>>, vector<64x16xf32>
    %c0_1 = arith.constant 0 : index
    %c0_2 = arith.constant 0 : index
    %1 = vector.load %arg2[%c0_1, %c0_2] : memref<120x32xf32, #tpu.memory_space<vmem>>, vector<16x32xf32>
    %c16 = arith.constant 16 : index
    %c0_3 = arith.constant 0 : index
    %2 = vector.load %arg2[%c16, %c0_3] : memref<120x32xf32, #tpu.memory_space<vmem>>, vector<32x32xf32>
    %c48 = arith.constant 48 : index
    %c0_4 = arith.constant 0 : index
    %3 = vector.load %arg2[%c48, %c0_4] : memref<120x32xf32, #tpu.memory_space<vmem>>, vector<32x32xf32>
    %c80 = arith.constant 80 : index
    %c0_5 = arith.constant 0 : index
    %4 = vector.load %arg2[%c80, %c0_5] : memref<120x32xf32, #tpu.memory_space<vmem>>, vector<32x32xf32>
    %c112 = arith.constant 112 : index
    %c0_6 = arith.constant 0 : index
    %5 = vector.load %arg2[%c112, %c0_6] : memref<120x32xf32, #tpu.memory_space<vmem>>, vector<1x32xf32>
    %c113 = arith.constant 113 : index
    %c0_7 = arith.constant 0 : index
    %6 = vector.load %arg2[%c113, %c0_7] : memref<120x32xf32, #tpu.memory_space<vmem>>, vector<1x32xf32>
    %c114 = arith.constant 114 : index
    %c0_8 = arith.constant 0 : index
    %7 = vector.load %arg2[%c114, %c0_8] : memref<120x32xf32, #tpu.memory_space<vmem>>, vector<1x32xf32>
    %c115 = arith.constant 115 : index
    %c0_9 = arith.constant 0 : index
    %8 = vector.load %arg2[%c115, %c0_9] : memref<120x32xf32, #tpu.memory_space<vmem>>, vector<1x32xf32>
    %cst = arith.constant dense<0.000000e+00> : vector<64x32xf32>
    %9 = tpu.matmul %0, %1, %cst {dimension_numbers = #tpu.dot_dimension_numbers<[1], [0], [0], [1], [0, 0, 1, 1], [], []>} : vector<64x16xf32>, vector<16x32xf32>, vector<64x32xf32> -> vector<64x32xf32>
    %10 = vector.broadcast %5 : vector<1x32xf32> to vector<64x32xf32>
    %11 = arith.addf %9, %10 : vector<64x32xf32>
    %cst_10 = arith.constant 0.000000e+00 : f32
    %12 = vector.broadcast %cst_10 : f32 to vector<64x32xf32>
    %13 = arith.maximumf %11, %12 : vector<64x32xf32>
    %14 = vector.broadcast %cst_10 : f32 to vector<64x32xf32>
    %15 = arith.subf %11, %14 : vector<64x32xf32>
    %16 = arith.cmpf one, %15, %15 : vector<64x32xf32>
    %17 = vector.broadcast %cst_10 : f32 to vector<64x32xf32>
    %18 = arith.addf %11, %17 : vector<64x32xf32>
    %19 = math.absf %15 : vector<64x32xf32>
    %cst_11 = arith.constant 0.000000e+00 : f32
    %20 = vector.broadcast %cst_11 : f32 to vector<64x32xf32>
    %21 = arith.subf %20, %19 : vector<64x32xf32>
    %22 = math.exp %21 : vector<64x32xf32>
    %23 = math.log1p %22 : vector<64x32xf32>
    %24 = arith.addf %13, %23 : vector<64x32xf32>
    %25 = arith.select %16, %18, %24 : vector<64x32xi1>, vector<64x32xf32>
    %cst_12 = arith.constant 0.693147182 : f32
    %26 = vector.broadcast %cst_12 : f32 to vector<64x32xf32>
    %27 = arith.subf %25, %26 : vector<64x32xf32>
    %cst_13 = arith.constant dense<0.000000e+00> : vector<64x32xf32>
    %28 = tpu.matmul %27, %2, %cst_13 {dimension_numbers = #tpu.dot_dimension_numbers<[1], [0], [0], [1], [0, 0, 1, 1], [], []>} : vector<64x32xf32>, vector<32x32xf32>, vector<64x32xf32> -> vector<64x32xf32>
    %29 = vector.broadcast %6 : vector<1x32xf32> to vector<64x32xf32>
    %30 = arith.addf %28, %29 : vector<64x32xf32>
    %cst_14 = arith.constant 0.000000e+00 : f32
    %31 = vector.broadcast %cst_14 : f32 to vector<64x32xf32>
    %32 = arith.maximumf %30, %31 : vector<64x32xf32>
    %33 = vector.broadcast %cst_14 : f32 to vector<64x32xf32>
    %34 = arith.subf %30, %33 : vector<64x32xf32>
    %35 = arith.cmpf one, %34, %34 : vector<64x32xf32>
    %36 = vector.broadcast %cst_14 : f32 to vector<64x32xf32>
    %37 = arith.addf %30, %36 : vector<64x32xf32>
    %38 = math.absf %34 : vector<64x32xf32>
    %cst_15 = arith.constant 0.000000e+00 : f32
    %39 = vector.broadcast %cst_15 : f32 to vector<64x32xf32>
    %40 = arith.subf %39, %38 : vector<64x32xf32>
    %41 = math.exp %40 : vector<64x32xf32>
    %42 = math.log1p %41 : vector<64x32xf32>
    %43 = arith.addf %32, %42 : vector<64x32xf32>
    %44 = arith.select %35, %37, %43 : vector<64x32xi1>, vector<64x32xf32>
    %cst_16 = arith.constant 0.693147182 : f32
    %45 = vector.broadcast %cst_16 : f32 to vector<64x32xf32>
    %46 = arith.subf %44, %45 : vector<64x32xf32>
    %c0_17 = arith.constant 0 : index
    %c0_18 = arith.constant 0 : index
    %47 = vector.load %arg3[%c0_17, %c0_18] : memref<64x32xf32, #tpu.memory_space<vmem>>, vector<64x32xf32>
    tpu.vector_store %arg3[%c0_17, %c0_18], %46 {strides = array<i32>} : memref<64x32xf32, #tpu.memory_space<vmem>>, vector<64x32xf32>,
    %cst_19 = arith.constant dense<0.000000e+00> : vector<64x32xf32>
    %48 = tpu.matmul %46, %3, %cst_19 {dimension_numbers = #tpu.dot_dimension_numbers<[1], [0], [0], [1], [0, 0, 1, 1], [], []>} : vector<64x32xf32>, vector<32x32xf32>, vector<64x32xf32> -> vector<64x32xf32>
    %49 = vector.broadcast %7 : vector<1x32xf32> to vector<64x32xf32>
    %50 = arith.addf %48, %49 : vector<64x32xf32>
    %cst_20 = arith.constant 0.000000e+00 : f32
    %51 = vector.broadcast %cst_20 : f32 to vector<64x32xf32>
    %52 = arith.maximumf %50, %51 : vector<64x32xf32>
    %53 = vector.broadcast %cst_20 : f32 to vector<64x32xf32>
    %54 = arith.subf %50, %53 : vector<64x32xf32>
    %55 = arith.cmpf one, %54, %54 : vector<64x32xf32>
    %56 = vector.broadcast %cst_20 : f32 to vector<64x32xf32>
    %57 = arith.addf %50, %56 : vector<64x32xf32>
    %58 = math.absf %54 : vector<64x32xf32>
    %cst_21 = arith.constant 0.000000e+00 : f32
    %59 = vector.broadcast %cst_21 : f32 to vector<64x32xf32>
    %60 = arith.subf %59, %58 : vector<64x32xf32>
    %61 = math.exp %60 : vector<64x32xf32>
    %62 = math.log1p %61 : vector<64x32xf32>
    %63 = arith.addf %52, %62 : vector<64x32xf32>
    %64 = arith.select %55, %57, %63 : vector<64x32xi1>, vector<64x32xf32>
    %cst_22 = arith.constant 0.693147182 : f32
    %65 = vector.broadcast %cst_22 : f32 to vector<64x32xf32>
    %66 = arith.subf %64, %65 : vector<64x32xf32>
    %67 = vector.shape_cast %66 : vector<64x32xf32> to vector<8x8x32xf32>
    %cst_23 = arith.constant dense<0.000000e+00> : vector<8x32xf32>
    %68 = vector.multi_reduction <add>, %67, %cst_23 [1] : vector<8x8x32xf32> to vector<8x32xf32>
    %cst_24 = arith.constant dense<0.000000e+00> : vector<8x32xf32>
    %69 = tpu.matmul %68, %4, %cst_24 {dimension_numbers = #tpu.dot_dimension_numbers<[1], [0], [0], [1], [0, 0, 1, 1], [], []>} : vector<8x32xf32>, vector<32x32xf32>, vector<8x32xf32> -> vector<8x32xf32>
    %70 = vector.broadcast %8 : vector<1x32xf32> to vector<8x32xf32>
    %71 = arith.addf %69, %70 : vector<8x32xf32>
    %72 = vector.extract_strided_slice %71 {offsets = [0, 0], sizes = [8, 2], strides = [1, 1]} : vector<8x32xf32> to vector<8x2xf32>
    %c0_25 = arith.constant 0 : index
    %c0_26 = arith.constant 0 : index
    %73 = vector.load %arg4[%c0_25, %c0_26] : memref<8x2xf32, #tpu.memory_space<vmem>>, vector<8x2xf32>
    tpu.vector_store %arg4[%c0_25, %c0_26], %72 {strides = array<i32>} : memref<8x2xf32, #tpu.memory_space<vmem>>, vector<8x2xf32>,
    return
  }
  func.func @transform_0(%arg0: i32) -> (i32, i32) {
    %c0_i32 = arith.constant 0 : i32
    %c0_i32_0 = arith.constant 0 : i32
    return %arg0, %c0_i32 : i32, i32
  }
  func.func @transform_1(%arg0: i32) -> (i32, i32) {
    %c0_i32 = arith.constant 0 : i32
    %c0_i32_0 = arith.constant 0 : i32
    %c0_i32_1 = arith.constant 0 : i32
    return %c0_i32, %c0_i32_0 : i32, i32
  }
  func.func @transform_2(%arg0: i32) -> (i32, i32) {
    %c0_i32 = arith.constant 0 : i32
    %c0_i32_0 = arith.constant 0 : i32
    return %arg0, %c0_i32 : i32, i32
  }
  func.func @transform_3(%arg0: i32) -> (i32, i32) {
    %c0_i32 = arith.constant 0 : i32
    %c0_i32_0 = arith.constant 0 : i32
    return %arg0, %c0_i32 : i32, i32
  }
}

</mosaic_0001>

<bundles_post_ra>
// kernel: atomistic_forward.1
= control target key start
LH: loop header
LB: loop body
LE: loop exit
PB: predicated region body
PF: predicated region fallthrough
CT: control target
= control target key end

     0   :  { %9 = vsyncpa [#allocation3], 0  ;;  %s2338_s0 = inlined_call_operand.vmem [shape: f32[128,16], index: 0, kind: input, shape index: {}]   ;;  %s2339_s1 = inlined_call_operand.vmem [shape: f32[120,32], index: 1, kind: input, shape index: {}]   ;;  %s2340_s2 = inlined_call_operand.hbm [shape: f32[128,32], index: 2, kind: output, shape index: {0}]   ;;  %s2341_s3 = inlined_call_operand.vmem [shape: f32[16,2], index: 3, kind: output, shape index: {1}]  }
   0x1   :  { %11 = vsyncpa [#allocation3 + $0x1], 0  ;;  %s1740_s12 = smov 0   ;;  %s1742_s13 = smov 0  }
   0x2   :  { %s1744_s14 = smov 0   ;;  %s1746_s15 = smov 0  }
   0x3 LB: > { %s1761_s16 = sadd.s32 4294967295, %s1713_s15   ;;  %s1337_s17 = sadd.s32 4294967294, %s1713_s15   ;;  %s1713_s15 = sphi %s1746_s15, %s2367_s15   ;;  %s1709_s14 = sphi %s1744_s14, %s2366_s14   ;;  %s1705_s13 = sphi %s1742_s13, %s2365_s13   ;;  %s1701_s12 = sphi %s1740_s12, %s2364_s12  }
   0x4   : > { %s1765_s18 = sadd.s32 1, %s1713_s15   ;;  %s71_s19 = sadd.s32 1, %s1709_s14 }
   0x5   : > { %s68_s20 = ssub.s32 %s1713_s15, %s1765_s18  ;;  %p81_p0 = scmp.ne.s32.totalorder %s1709_s14, %s1705_s13 }
   0x6   : > { %p69_p1 = scmp.eq.s32.totalorder %s68_s20, 0  ;;  %p82_p2 = scmp.eq.s32.totalorder %s1761_s16, 1 }
   0x7   : > { %p87_p3 = scmp.ne.s32.totalorder %s1705_s13, %s1701_s12  ;;  %p88_p4 = scmp.eq.s32.totalorder %s1337_s17, 1 }
   0x8   : > { %s1776_s21 = scalar_select %p69_p1, %s1709_s14, %s71_s19  }
   0x9   : > { %p1778_p5 = por %p82_p2, %p81_p0  ;;  %p1782_p6 = por %p88_p4, %p87_p3 }
   0xa   : > { %p1340_p7 = scmp.ge.s32.totalorder %s1713_s15, 1  ;;  %p144_p8 = scmp.lt.s32.totalorder %s1713_s15, 3 }
   0xc   : > { %p145_p9 = pnand %p1340_p7, %p144_p8 }
   0xd   : > { %s1342_s28 = sshll.u32 (!%p145_p9), %s1761_s16, 3  ;;  %s163_s8 = sand.u32 (!%p145_p9), 1, %s1705_s13  }
   0xe   : > { %148 = sbr.rel (%p145_p9) target bundleno = 979 (0x3d3), region = 28  ;;  %p173_p10 = scmp.lt.s32.totalorder (!%p145_p9), %s1342_s28, 15 }
   0xf   : > { %s1341_s9 = sshll.u32 (!%p145_p9), %s163_s8, 6  ;;  %s1403_s30 = sshll.u32 (!%p145_p9), %s1761_s16, 10 }
  0x10   : > { %s2044_s10 = scalar_lea.vmem (!%p145_p9), [#allocation2], %s1341_s9  ;;  %s2284_s7 = scalar_lea.hbm (!%p145_p9), %s2340_s2, %s1403_s30 }
  0x11   : > { %s1248_s4 = sshll.u32 (!%p145_p9), %s2044_s10, 4  ;;  %s2290_s9 = scalar_lea.sflag (!%p145_p9), [#allocation3], %s163_s8  ;;  %s2286_s4 = int_to_ptr.vmem [resolvable:$true] %s1248_s4 }
  0x12   : > { %s1653_s11 = scalar_lea.vmem (!%p145_p9), %s2286_s4, 1024  ;;  %s1717_s17 = smov (!%p145_p9), [#allocation2]  }
  0x13   : > { %v192_v0 = vld [vmem:[%s2339_s1 + $0x8] sm:$0xff]  ;;  %v191_v1 = vld [vmem:[%s2339_s1] sm:$0xff]  ;;  %s2369_s28 = smov (!%p173_p10, %s1342_s28), 15  ;;  %vm213_vm0 = vcmask 130048   ;;  %v194_v12 = vld [vmem:[%s2339_s1 + $0x18] sm:$0xff]  ;;  %vm499_vm2 = vcmask 261120   ;;  %p1654_p11 = scmp.ne.s32.totalorder %s2286_s4, %s1653_s11 }
  0x14   : > { %1443 = vmatprep.subr.mxu0 %v192_v0  ;;  %1510 = vmatprep.subr.mxu1 %v192_v0  ;;  %s1343_s29 = sshll.u32 %s2369_s28, 3  ;;  %v196_v10 = vld [vmem:[%s2339_s1 + $0x28] sm:$0xff]  ;;  %v195_v11 = vld [vmem:[%s2339_s1 + $0x20] sm:$0xff]  ;;  %v193_v13 = vld [vmem:[%s2339_s1 + $0x10] sm:$0xff] }
  0x15   : > { %1444 = vmatpush3.msra.mxu0 %v192_v0  ;;  %1512 = vmatpush3.msra.mxu1 %v192_v0  ;;  %s176_s5 = scalar_lea.vmem %s2338_s0, %s1343_s29  ;;  %v1345_v14 = vld [vmem:[%s2339_s1 + $0x70] ss:$0 sm:$0xff]  ;;  %p1655_p12 = pnand %p1654_p11, %p1778_p5 }
  0x16   : > { %1445 = vmatprep.subr.mxu0 %v191_v1  ;;  %1511 = vmatprep.subr.mxu1 %v191_v1  ;;  %v183_v2 = vld [vmem:[%s176_s5] sm:$0xff]  ;;  %v184_v4 = vld [vmem:[%s176_s5 + $0x8] sm:$0xff]  ;;  %v185_v6 = vld [vmem:[%s176_s5 + $0x10] sm:$0xff] }
  0x17   : > { %1446 = vmatpush3.msra.mxu0 %v191_v1  ;;  %1513 = vmatpush3.msra.mxu1 %v191_v1  ;;  %v187_v3 = vld [vmem:[%s176_s5 + $0x20] sm:$0xff]  ;;  %v188_v5 = vld [vmem:[%s176_s5 + $0x28] sm:$0xff]  ;;  %v189_v7 = vld [vmem:[%s176_s5 + $0x30] sm:$0xff]  ;;  %p1656_p13 = pneg %p1655_p12 }
  0x18   : > { %1447 = vmatprep.mubr.msk.f32.mxu0 %vm213_vm0, %v183_v2  ;;  %1453 = vmatprep.mubr.msk.f32.mxu1 %vm213_vm0, %v187_v3  ;;  %v186_v8 = vld [vmem:[%s176_s5 + $0x18] sm:$0xff] }
  0x19   : > { %1448 = vmatmul.mubr.msk.f32.vlgmr.msra.gmra.mxu0 %vm213_vm0, %v184_v4  ;;  %1454 = vmatmul.mubr.msk.f32.vlgmr.msra.gmra.mxu1 %vm213_vm0, %v188_v5  ;;  %v190_v9 = vld [vmem:[%s176_s5 + $0x38] sm:$0xff] }
  0x1a   : > { %1450 = vmatprep.mubr.msk.f32.mxu0 %vm213_vm0, %v185_v6  ;;  %1456 = vmatprep.mubr.msk.f32.mxu1 %vm213_vm0, %v189_v7 }
  0x1b   : > { %1459 = vmatprep.subr.mxu1 %v196_v10 }
  0x1c   : > { %1460 = vmatpush3.msra.mxu1 %v196_v10 }
  0x1d   : > { %1451 = vmatmul.mubr.msk.f32.gmra.mxu0 %vm213_vm0, %v186_v8  ;;  %1457 = vmatmul.mubr.msk.f32.gmra.mxu1 %vm213_vm0, %v190_v9 }
  0x1e   : > { %1461 = vmatprep.subr.mxu1 %v195_v11 }
  0x1f   : > { %1462 = vmatpush3.msra.mxu1 %v195_v11 }
  0x20   : > { %1463 = vmatprep.subr.mxu1 %v194_v12 }
  0x21   : > { %1464 = vmatpush3.msra.mxu1 %v194_v12 }
  0x22   : > { %1465 = vmatprep.subr.mxu1 %v193_v13 }
  0x23   : > { %1466 = vmatpush3.msra.mxu1 %v193_v13 }
  0xd9   : > { %v1449_v15 = vpop.f32.mrf.mxu0  ;;  %v1455_v16 = vpop.f32.mrf.mxu1 }
  0xda   : > { %v1821_v17 = vadd.f32 %v1449_v15, %v1345_v14  ;;  %v1823_v18 = vadd.f32 %v1455_v16, %v1345_v14 }
  0xdb   : > { %v304_v19 = vpop.f32.mrf.mxu0  ;;  %v324_v20 = vpop.f32.mrf.mxu1 }
  0xdc   : > { %v368_v21 = vand.u32 2147483647, %v1821_v17  ;;  %v372_v22 = vand.u32 2147483647, %v1823_v18  ;;  %v1827_v23 = vadd.f32 %v1345_v14, %v304_v19  ;;  %v1829_v24 = vadd.f32 %v1345_v14, %v324_v20 }
  0xdd   : > { %v1452_v25 = vpop.f32.mrf.mxu0  ;;  %v1458_v26 = vpop.f32.mrf.mxu1  ;;  %v344_v8 = vmax.f32 %v1821_v17, 0.0  ;;  %vm352_vm1 = vcmp.ne.f32.partialorder %v1821_v17, %v1821_v17  ;;  %v348_v19 = vmax.f32 %v1823_v18, 0.0  ;;  %vm356_vm15 = vcmp.ne.f32.partialorder %v1823_v18, %v1823_v18 }
  0xde   : > { %v376_v27 = vsub.f32 0.0, %v368_v21  ;;  %v1831_v28 = vadd.f32 %v1452_v25, %v1345_v14  ;;  %v380_v29 = vsub.f32 0.0, %v372_v22  ;;  %v367_v30 = vand.u32 2147483647, %v1827_v23 }
  0xdf   : > { %v1834_v31 = vadd.f32 %v1458_v26, %v1345_v14  ;;  %v371_v33 = vand.u32 2147483647, %v1829_v24  ;;  %v314_v36 = vpop.f32.mrf.mxu0  ;;  %v334_v37 = vpop.f32.mrf.mxu1  ;;  %v343_v20 = vmax.f32 %v1827_v23, 0.0  ;;  %v347_v21 = vmax.f32 %v1829_v24, 0.0 }
  0xe0   : > { %v385_v32 = vmul.f32 1.442695, %v376_v27  ;;  %v393_v34 = vmul.f32 1.442695, %v380_v29  ;;  %v375_v35 = vsub.f32 0.0, %v367_v30  ;;  %v1839_v44 = vadd.f32 %v1345_v14, %v314_v36 }
  0xe1   : > { %v379_v38 = vsub.f32 0.0, %v371_v33  ;;  %v370_v39 = vand.u32 2147483647, %v1831_v28  ;;  %v374_v41 = vand.u32 2147483647, %v1834_v31  ;;  %v1841_v45 = vadd.f32 %v1345_v14, %v334_v37 }
  0xe2   : > { %1557 = vpow2.f32 %v385_v32  ;;  %v383_v40 = vmul.f32 1.442695, %v375_v35  ;;  %v369_v49 = vand.u32 2147483647, %v1839_v44  ;;  %v346_v22 = vmax.f32 %v1831_v28, 0.0 }
  0xe3   : > { %1559 = vpow2.f32 %v393_v34  ;;  %v391_v42 = vmul.f32 1.442695, %v379_v38  ;;  %v378_v43 = vsub.f32 0.0, %v370_v39  ;;  %v382_v46 = vsub.f32 0.0, %v374_v41 }
  0xe4   : > { %1561 = vpow2.f32 %v383_v40  ;;  %v373_v50 = vand.u32 2147483647, %v1841_v45  ;;  %v377_v51 = vsub.f32 0.0, %v369_v49  ;;  %v345_v33 = vmax.f32 %v1839_v44, 0.0 }
  0xe5   : > { %1563 = vpow2.f32 %v391_v42  ;;  %v389_v47 = vmul.f32 1.442695, %v378_v43  ;;  %v397_v48 = vmul.f32 1.442695, %v382_v46  ;;  %vm351_vm5 = vcmp.ne.f32.partialorder %v1827_v23, %v1827_v23 }
  0xe6   : > { %v381_v52 = vsub.f32 0.0, %v373_v50  ;;  %v387_v53 = vmul.f32 1.442695, %v377_v51  ;;  %vm355_vm10 = vcmp.ne.f32.partialorder %v1829_v24, %v1829_v24  ;;  %vm354_vm11 = vcmp.ne.f32.partialorder %v1831_v28, %v1831_v28 }
  0xe7   : > { %1565 = vpow2.f32 %v389_v47  ;;  %vm353_vm14 = vcmp.ne.f32.partialorder %v1839_v44, %v1839_v44  ;;  %vm357_vm0 = vcmp.ne.f32.partialorder %v1841_v45, %v1841_v45  ;;  %v1362_v47 = vld [vmem:[%s2339_s1 + $0x71] ss:$0 sm:$0xff] }
  0xe8   : > { %1567 = vpow2.f32 %v397_v48  ;;  %v395_v54 = vmul.f32 1.442695, %v381_v52 }
  0xe9   : > { %1569 = vpow2.f32 %v387_v53 }
  0xea   : > { %1571 = vpow2.f32 %v395_v54 }
  0xef   : > { %v1558_v55 = vpop.eup %1557 }
  0xf0   : > { %v1845_v56 = vpop.eup %1559  ;;  %v408_v57 = vadd.f32 1.0, %v1558_v55  ;;  %v411_v2 = vmul.f32 -0.5, %v1558_v55  ;;  %v414_v11 = vand.u32 2147483647, %v1558_v55 }
  0xf1   : > { %v1562_v58 = vpop.eup %1561  ;;  %v444_v60 = vadd.f32 1.0, %v1845_v56  ;;  %v447_v12 = vmul.f32 -0.5, %v1845_v56  ;;  %v450_v27 = vand.u32 2147483647, %v1845_v56 }
  0xf2   : > { %1573 = vlog2.f32 %v408_v57  ;;  %v1847_v59 = vpop.eup %1563  ;;  %v399_v61 = vadd.f32 1.0, %v1562_v58  ;;  %v402_v5 = vmul.f32 -0.5, %v1562_v58  ;;  %v412_v9 = vadd.f32 1.0, %v411_v2 }
  0xf3   : > { %v435_v62 = vadd.f32 1.0, %v1847_v59  ;;  %v438_v13 = vmul.f32 -0.5, %v1847_v59  ;;  %v405_v29 = vand.u32 2147483647, %v1562_v58  ;;  %vm415_vm3 = vcmp.lt.f32.partialorder %v414_v11, 0.0004427343 }
  0xf4   : > { %v1851_v63 = vpop.eup %1565  ;;  %1575 = vlog2.f32 %v399_v61  ;;  %v403_v14 = vadd.f32 1.0, %v402_v5  ;;  %v413_v26 = vmul.f32 %v1558_v55, %v412_v9  ;;  %v448_v30 = vadd.f32 1.0, %v447_v12 }
  0xf5   : > { %v1853_v0 = vpop.eup %1567  ;;  %1577 = vlog2.f32 %v435_v62  ;;  %v426_v1 = vadd.f32 1.0, %v1851_v63  ;;  %v429_v15 = vmul.f32 -0.5, %v1851_v63  ;;  %v439_v32 = vadd.f32 1.0, %v438_v13 }
  0xf6   : > { %1579 = vlog2.f32 %v444_v60  ;;  %v462_v3 = vadd.f32 1.0, %v1853_v0  ;;  %v1857_v4 = vpop.eup %1569  ;;  %v404_v36 = vmul.f32 %v1562_v58, %v403_v14  ;;  %v432_v38 = vand.u32 2147483647, %v1851_v63 }
  0xf7   : > { %1581 = vlog2.f32 %v426_v1  ;;  %v1859_v6 = vpop.eup %1571  ;;  %v417_v7 = vadd.f32 1.0, %v1857_v4  ;;  %v430_v37 = vadd.f32 1.0, %v429_v15  ;;  %v420_v42 = vmul.f32 -0.5, %v1857_v4 }
  0xf8   : > { %1583 = vlog2.f32 %v462_v3  ;;  %v453_v10 = vadd.f32 1.0, %v1859_v6  ;;  %v456_v43 = vmul.f32 -0.5, %v1859_v6  ;;  %vm1878_vm4 = vcmp.lt.f32.partialorder %v450_v27, 0.0004427343 }
  0xf9   : > { %1585 = vlog2.f32 %v417_v7  ;;  %vm406_vm6 = vcmp.lt.f32.partialorder %v405_v29, 0.0004427343  ;;  %v441_v48 = vand.u32 2147483647, %v1847_v59  ;;  %v440_v52 = vmul.f32 %v1847_v59, %v439_v32 }
  0xfa   : > { %1587 = vlog2.f32 %v453_v10  ;;  %v465_v53 = vmul.f32 -0.5, %v1853_v0  ;;  %v431_v57 = vmul.f32 %v1851_v63, %v430_v37  ;;  %v423_v58 = vand.u32 2147483647, %v1857_v4 }
  0xfb   : > { %vm1893_vm7 = vcmp.lt.f32.partialorder %v432_v38, 0.0004427343  ;;  %v421_v62 = vadd.f32 1.0, %v420_v42  ;;  %v457_v1 = vadd.f32 1.0, %v456_v43  ;;  %vm1897_vm8 = vcmp.lt.f32.partialorder %v441_v48, 0.0004427343 }
  0xfc   : > { %v468_v7 = vand.u32 2147483647, %v1853_v0  ;;  %v449_v12 = vmul.f32 %v1845_v56, %v448_v30  ;;  %v466_v13 = vadd.f32 1.0, %v465_v53  ;;  %vm1912_vm9 = vcmp.lt.f32.partialorder %v423_v58, 0.0004427343 }
  0xfd   : > { %v349_v30 = vmax.f32 %v1841_v45, 0.0 }
  0xfe   : > { %vm469_vm13 = vcmp.lt.f32.partialorder %v468_v7, 0.0004427343 }
  0xff   : > { %v1574_v16 = vpop.eup %1573 }
 0x100   : > { %v410_v25 = vmul.f32 0.6931472, %v1574_v16 }
 0x101   : > { %v1576_v34 = vpop.eup %1575 }
 0x102   : > { %v416_v35 = vsel %vm415_vm3, %v413_v26, %v410_v25  ;;  %v1578_v39 = vpop.eup %1577  ;;  %v401_v41 = vmul.f32 0.6931472, %v1576_v34  ;;  %v458_v25 = vmul.f32 %v1859_v6, %v457_v1 }
 0x103   : > { %v472_v40 = vadd.f32 %v416_v35, %v344_v8  ;;  %v1580_v46 = vpop.eup %1579  ;;  %v437_v51 = vmul.f32 0.6931472, %v1578_v39  ;;  %v459_v8 = vand.u32 2147483647, %v1859_v6  ;;  %v467_v6 = vmul.f32 %v1853_v0, %v466_v13 }
 0x104   : > { %v1582_v49 = vpop.eup %1581  ;;  %v407_v50 = vsel %vm406_vm6, %v404_v36, %v401_v41  ;;  %v446_v59 = vmul.f32 0.6931472, %v1580_v46  ;;  %v350_v0 = vmax.f32 %v1834_v31, 0.0  ;;  %v197_v46 = vld [vmem:[%s2339_s1 + $0x30] sm:$0xff] }
 0x105   : > { %v471_v54 = vadd.f32 %v407_v50, %v343_v20  ;;  %v428_v55 = vmul.f32 0.6931472, %v1582_v49  ;;  %v480_v60 = vsel %vm352_vm1, %v1821_v17, %v472_v40  ;;  %v1584_v17 = vpop.eup %1583  ;;  %v443_v5 = vsel %vm1897_vm8, %v440_v52, %v437_v51 }
 0x106   : > { %v1586_v10 = vpop.eup %1585  ;;  %v1355_v11 = vadd.f32 -0.6931472, %v480_v60  ;;  %v422_v20 = vmul.f32 %v1857_v4, %v421_v62  ;;  %v452_v26 = vsel %vm1878_vm4, %v449_v12, %v446_v59  ;;  %v475_v27 = vadd.f32 %v443_v5, %v347_v21 }
 0x107   : > { %v434_v63 = vsel %vm1893_vm7, %v431_v57, %v428_v55  ;;  %v479_v3 = vsel %vm351_vm5, %v1827_v23, %v471_v54  ;;  %v1588_v15 = vpop.eup %1587  ;;  %v419_v16 = vmul.f32 0.6931472, %v1586_v10  ;;  %v464_v29 = vmul.f32 0.6931472, %v1584_v17 }
 0x108   : > { %v1354_v9 = vadd.f32 -0.6931472, %v479_v3  ;;  %v474_v23 = vadd.f32 %v434_v63, %v346_v22  ;;  %v455_v56 = vmul.f32 0.6931472, %v1588_v15  ;;  %vm460_vm12 = vcmp.lt.f32.partialorder %v459_v8, 0.0004427343 }
 0x109   : > { %v425_v4 = vsel %vm1912_vm9, %v422_v20, %v419_v16  ;;  %v476_v32 = vadd.f32 %v452_v26, %v348_v19  ;;  %v470_v35 = vsel %vm469_vm13, %v467_v6, %v464_v29  ;;  %v483_v38 = vsel %vm355_vm10, %v1829_v24, %v475_v27 }
 0x10a   : > { %1467 = vmatprep.mubr.msk.f32.mxu1 %vm499_vm2, %v1354_v9  ;;  %v473_v22 = vadd.f32 %v425_v4, %v345_v33  ;;  %v461_v21 = vsel %vm460_vm12, %v458_v25, %v455_v56  ;;  %v482_v34 = vsel %vm354_vm11, %v1831_v28, %v474_v23  ;;  %v478_v19 = vadd.f32 %v470_v35, %v350_v0 }
 0x10b   : > { %1468 = vmatmul.mubr.msk.f32.vlgmr.msra.gmra.mxu1 %vm499_vm2, %v1355_v11  ;;  %v477_v36 = vadd.f32 %v461_v21, %v349_v30  ;;  %v1357_v39 = vadd.f32 -0.6931472, %v482_v34  ;;  %v1358_v28 = vadd.f32 -0.6931472, %v483_v38  ;;  %v484_v40 = vsel %vm356_vm15, %v1823_v18, %v476_v32  ;;  %v200_v18 = vld [vmem:[%s2339_s1 + $0x48] sm:$0xff] }
 0x10c   : > { %v481_v37 = vsel %vm353_vm14, %v1839_v44, %v473_v22  ;;  %vm358_vm1 = vcmp.ne.f32.partialorder %v1834_v31, %v1834_v31  ;;  %v1359_v44 = vadd.f32 -0.6931472, %v484_v40  ;;  %1479 = vmatprep.subr.mxu0 %v200_v18 }
 0x10d   : > { %v1356_v33 = vadd.f32 -0.6931472, %v481_v37  ;;  %v485_v24 = vsel %vm357_vm0, %v1841_v45, %v477_v36  ;;  %v486_v42 = vsel %vm358_vm1, %v1834_v31, %v478_v19  ;;  %1480 = vmatpush3.msra.mxu0 %v200_v18  ;;  %v199_v45 = vld [vmem:[%s2339_s1 + $0x40] sm:$0xff]  ;;  %v198_v31 = vld [vmem:[%s2339_s1 + $0x38] sm:$0xff] }
 0x10e   : > { %v1360_v41 = vadd.f32 -0.6931472, %v485_v24  ;;  %v1361_v43 = vadd.f32 -0.6931472, %v486_v42  ;;  %1481 = vmatprep.subr.mxu0 %v199_v45 }
 0x10f   : > { %1470 = vmatprep.mubr.msk.f32.mxu1 %vm499_vm2, %v1356_v33  ;;  %1482 = vmatpush3.msra.mxu0 %v199_v45 }
 0x110   : > { %1471 = vmatmul.mubr.msk.f32.gmra.mxu1 %vm499_vm2, %v1357_v39  ;;  %1483 = vmatprep.subr.mxu0 %v198_v31 }
 0x111   : > { %1473 = vmatprep.mubr.msk.f32.mxu1 %vm499_vm2, %v1358_v28  ;;  %1484 = vmatpush3.msra.mxu0 %v198_v31 }
 0x112   : > { %1485 = vmatprep.subr.mxu0 %v197_v46 }
 0x113   : > { %1486 = vmatpush3.msra.mxu0 %v197_v46 }
 0x114   : > { %1474 = vmatmul.mubr.msk.f32.gmra.mxu1 %vm499_vm2, %v1359_v44 }
 0x115   : > { %1476 = vmatprep.mubr.msk.f32.mxu1 %vm499_vm2, %v1360_v41 }
 0x118   : > { %1477 = vmatmul.mubr.msk.f32.gmra.mxu1 %vm499_vm2, %v1361_v43 }
 0x1cb   : > { %v1469_v48 = vpop.f32.mrf.mxu1 }
 0x1cc   : > { %v1968_v49 = vadd.f32 %v1469_v48, %v1362_v47 }
 0x1cd   : > { %v590_v50 = vpop.f32.mrf.mxu1 }
 0x1ce   : > { %v654_v51 = vand.u32 2147483647, %v1968_v49  ;;  %v1971_v52 = vadd.f32 %v1362_v47, %v590_v50  ;;  %v630_v43 = vmax.f32 %v1968_v49, 0.0  ;;  %vm638_vm3 = vcmp.ne.f32.partialorder %v1968_v49, %v1968_v49 }
 0x1d0   : > { %v662_v53 = vsub.f32 0.0, %v654_v51  ;;  %v653_v54 = vand.u32 2147483647, %v1971_v52  ;;  %v1472_v58 = vpop.f32.mrf.mxu1  ;;  %v629_v48 = vmax.f32 %v1971_v52, 0.0  ;;  %vm637_vm6 = vcmp.ne.f32.partialorder %v1971_v52, %v1971_v52 }
 0x1d1   : > { %v1974_v61 = vadd.f32 %v1472_v58, %v1362_v47 }
 0x1d2   : > { %v671_v55 = vmul.f32 1.442695, %v662_v53  ;;  %v661_v57 = vsub.f32 0.0, %v653_v54  ;;  %v600_v62 = vpop.f32.mrf.mxu1 }
 0x1d3   : > { %v656_v1 = vand.u32 2147483647, %v1974_v61  ;;  %v1977_v59 = vadd.f32 %v1362_v47, %v600_v62  ;;  %vm640_vm7 = vcmp.ne.f32.partialorder %v1974_v61, %v1974_v61 }
 0x1d4   : > { %1589 = vpow2.f32 %v671_v55  ;;  %v669_v60 = vmul.f32 1.442695, %v661_v57  ;;  %v1475_v2 = vpop.f32.mrf.mxu1 }
 0x1d5   : > { %v664_v63 = vsub.f32 0.0, %v656_v1  ;;  %v1979_v3 = vadd.f32 %v1475_v2, %v1362_v47  ;;  %v655_v17 = vand.u32 2147483647, %v1977_v59  ;;  %vm639_vm9 = vcmp.ne.f32.partialorder %v1977_v59, %v1977_v59 }
 0x1d6   : > { %1591 = vpow2.f32 %v669_v60  ;;  %v610_v5 = vpop.f32.mrf.mxu1 }
 0x1d7   : > { %v675_v7 = vmul.f32 1.442695, %v664_v63  ;;  %v658_v8 = vand.u32 2147483647, %v1979_v3  ;;  %v663_v9 = vsub.f32 0.0, %v655_v17  ;;  %v1983_v10 = vadd.f32 %v1362_v47, %v610_v5 }
 0x1d8   : > { %v1478_v11 = vpop.f32.mrf.mxu1  ;;  %v632_v17 = vmax.f32 %v1974_v61, 0.0  ;;  %vm642_vm11 = vcmp.ne.f32.partialorder %v1979_v3, %v1979_v3 }
 0x1d9   : > { %1593 = vpow2.f32 %v675_v7  ;;  %v666_v12 = vsub.f32 0.0, %v658_v8  ;;  %v1985_v13 = vadd.f32 %v1478_v11, %v1362_v47  ;;  %v673_v14 = vmul.f32 1.442695, %v663_v9 }
 0x1da   : > { %v657_v15 = vand.u32 2147483647, %v1983_v10  ;;  %v620_v23 = vpop.f32.mrf.mxu1  ;;  %vm641_vm15 = vcmp.ne.f32.partialorder %v1983_v10, %v1983_v10 }
 0x1db   : > { %v679_v16 = vmul.f32 1.442695, %v666_v12  ;;  %v660_v20 = vand.u32 2147483647, %v1985_v13  ;;  %1595 = vpow2.f32 %v673_v14  ;;  %v1989_v26 = vadd.f32 %v1362_v47, %v620_v23 }
 0x1dc   : > { %v665_v25 = vsub.f32 0.0, %v657_v15  ;;  %vm644_vm1 = vcmp.ne.f32.partialorder %v1985_v13, %v1985_v13 }
 0x1dd   : > { %1597 = vpow2.f32 %v679_v16  ;;  %v668_v27 = vsub.f32 0.0, %v660_v20  ;;  %v659_v4 = vand.u32 2147483647, %v1989_v26  ;;  %v631_v16 = vmax.f32 %v1977_v59, 0.0 }
 0x1de   : > { %v677_v56 = vmul.f32 1.442695, %v665_v25 }
 0x1df   : > { %v683_v22 = vmul.f32 1.442695, %v668_v27  ;;  %v667_v21 = vsub.f32 0.0, %v659_v4  ;;  %v634_v4 = vmax.f32 %v1979_v3, 0.0 }
 0x1e0   : > { %1599 = vpow2.f32 %v677_v56 }
 0x1e1   : > { %v1590_v29 = vpop.eup %1589  ;;  %v681_v34 = vmul.f32 1.442695, %v667_v21 }
 0x1e2   : > { %v694_v6 = vadd.f32 1.0, %v1590_v29  ;;  %v697_v36 = vmul.f32 -0.5, %v1590_v29  ;;  %v700_v40 = vand.u32 2147483647, %v1590_v29 }
 0x1e3   : > { %v1592_v30 = vpop.eup %1591 }
 0x1e4   : > { %1601 = vlog2.f32 %v694_v6  ;;  %v685_v32 = vadd.f32 1.0, %v1592_v30  ;;  %v688_v0 = vmul.f32 -0.5, %v1592_v30  ;;  %v698_v19 = vadd.f32 1.0, %v697_v36 }
 0x1e5   : > { %1603 = vpow2.f32 %v683_v22  ;;  %v691_v24 = vand.u32 2147483647, %v1592_v30  ;;  %vm701_vm4 = vcmp.lt.f32.partialorder %v700_v40, 0.0004427343  ;;  %v633_v40 = vmax.f32 %v1983_v10, 0.0 }
 0x1e6   : > { %1605 = vlog2.f32 %v685_v32  ;;  %v1992_v35 = vpop.eup %1593  ;;  %v689_v41 = vadd.f32 1.0, %v688_v0  ;;  %v699_v47 = vmul.f32 %v1590_v29, %v698_v19 }
 0x1e7   : > { %1607 = vpow2.f32 %v681_v34  ;;  %v712_v37 = vadd.f32 1.0, %v1992_v35  ;;  %v715_v18 = vmul.f32 -0.5, %v1992_v35  ;;  %vm2012_vm5 = vcmp.lt.f32.partialorder %v691_v24, 0.0004427343 }
 0x1e8   : > { %v1995_v38 = vpop.eup %1595  ;;  %v690_v58 = vmul.f32 %v1592_v30, %v689_v41  ;;  %v718_v9 = vand.u32 2147483647, %v1992_v35 }
 0x1e9   : > { %1609 = vlog2.f32 %v712_v37  ;;  %v703_v39 = vadd.f32 1.0, %v1995_v38  ;;  %v706_v60 = vmul.f32 -0.5, %v1995_v38  ;;  %v716_v1 = vadd.f32 1.0, %v715_v18 }
 0x1ea   : > { %v1997_v33 = vpop.eup %1597  ;;  %v709_v14 = vand.u32 2147483647, %v1995_v38  ;;  %vm719_vm8 = vcmp.lt.f32.partialorder %v718_v9, 0.0004427343 }
 0x1eb   : > { %v730_v28 = vadd.f32 1.0, %v1997_v33  ;;  %1611 = vlog2.f32 %v703_v39  ;;  %v733_v5 = vmul.f32 -0.5, %v1997_v33  ;;  %v707_v12 = vadd.f32 1.0, %v706_v60 }
 0x1ec   : > { %v717_v23 = vmul.f32 %v1992_v35, %v716_v1  ;;  %v736_v6 = vand.u32 2147483647, %v1997_v33  ;;  %vm2054_vm10 = vcmp.lt.f32.partialorder %v709_v14, 0.0004427343  ;;  %v204_v14 = vld [vmem:[%s2339_s1 + $0x68] sm:$0xff] }
 0x1ed   : > { %v2001_v44 = vpop.eup %1599  ;;  %1613 = vlog2.f32 %v730_v28  ;;  %v734_v27 = vadd.f32 1.0, %v733_v5  ;;  %v708_v30 = vmul.f32 %v1995_v38, %v707_v12 }
 0x1ee   : > { %v721_v45 = vadd.f32 1.0, %v2001_v44  ;;  %v724_v20 = vmul.f32 -0.5, %v2001_v44  ;;  %v727_v39 = vand.u32 2147483647, %v2001_v44  ;;  %vm737_vm12 = vcmp.lt.f32.partialorder %v736_v6, 0.0004427343 }
 0x1ef   : > { %v735_v0 = vmul.f32 %v1997_v33, %v734_v27 }
 0x1f0   : > { %1615 = vlog2.f32 %v721_v45  ;;  %v725_v36 = vadd.f32 1.0, %v724_v20  ;;  %vm728_vm13 = vcmp.lt.f32.partialorder %v727_v39, 0.0004427343 }
 0x1f1   : > { %v1602_v42 = vpop.eup %1601 }
 0x1f2   : > { %v2007_v31 = vpop.eup %1603  ;;  %v696_v46 = vmul.f32 0.6931472, %v1602_v42 }
 0x1f3   : > { %v1606_v50 = vpop.eup %1605  ;;  %v748_v53 = vadd.f32 1.0, %v2007_v31  ;;  %v751_v29 = vmul.f32 -0.5, %v2007_v31  ;;  %v754_v33 = vand.u32 2147483647, %v2007_v31 }
 0x1f4   : > { %v2017_v54 = vpop.eup %1607  ;;  %v702_v55 = vsel %vm701_vm4, %v699_v47, %v696_v46  ;;  %v687_v57 = vmul.f32 0.6931472, %v1606_v50  ;;  %v726_v47 = vmul.f32 %v2001_v44, %v725_v36  ;;  %vm1716_vm4 = vmmov 0  }
 0x1f5   : > { %v758_v62 = vadd.f32 %v702_v55, %v630_v43  ;;  %1617 = vlog2.f32 %v748_v53  ;;  %v739_v2 = vadd.f32 1.0, %v2017_v54  ;;  %v742_v37 = vmul.f32 -0.5, %v2017_v54 }
 0x1f6   : > { %v693_v63 = vsel %vm2012_vm5, %v690_v58, %v687_v57  ;;  %v1610_v15 = vpop.eup %1609  ;;  %v752_v19 = vadd.f32 1.0, %v751_v29  ;;  %v745_v53 = vand.u32 2147483647, %v2017_v54  ;;  %vm755_vm14 = vcmp.lt.f32.partialorder %v754_v33, 0.0004427343 }
 0x1f7   : > { %v766_v7 = vsel %vm638_vm3, %v1968_v49, %v758_v62  ;;  %v757_v8 = vadd.f32 %v693_v63, %v629_v48  ;;  %1619 = vlog2.f32 %v739_v2  ;;  %v714_v25 = vmul.f32 0.6931472, %v1610_v15  ;;  %v202_v15 = vld [vmem:[%s2339_s1 + $0x58] sm:$0xff] }
 0x1f8   : > { %v1372_v11 = vadd.f32 -0.6931472, %v766_v7  ;;  %v743_v48 = vadd.f32 1.0, %v742_v37  ;;  %v753_v51 = vmul.f32 %v2007_v31, %v752_v19  ;;  %v636_v62 = vmax.f32 %v1985_v13, 0.0 }
 0x1f9   : > { %v765_v49 = vsel %vm637_vm6, %v1971_v52, %v757_v8  ;;  %v1612_v52 = vpop.eup %1611  ;;  %v720_v22 = vsel %vm719_vm8, %v717_v23, %v714_v25  ;;  %vm746_vm0 = vcmp.lt.f32.partialorder %v745_v53, 0.0004427343  ;;  %vm643_vm3 = vcmp.ne.f32.partialorder %v1989_v26, %v1989_v26  ;;  %v201_v23 = vld [vmem:[%s2339_s1 + $0x50] sm:$0xff] }
 0x1fa   : > { %782 = vst.msk [vmem:[%s2044_s10 + $0x8] sm:$0xff] %vm499_vm2, %v1372_v11  ;;  %v1371_v56 = vadd.f32 -0.6931472, %v765_v49  ;;  %v1614_v32 = vpop.eup %1613  ;;  %v760_v34 = vadd.f32 %v720_v22, %v632_v17  ;;  %v705_v35 = vmul.f32 0.6931472, %v1612_v52  ;;  %v744_v63 = vmul.f32 %v2017_v54, %v743_v48 }
 0x1fb   : > { %v732_v38 = vmul.f32 0.6931472, %v1614_v32  ;;  %v635_v17 = vmax.f32 %v1989_v26, 0.0 }
 0x1fc   : > { %781 = vst.msk [vmem:[%s2044_s10] sm:$0xff] %vm499_vm2, %v1371_v56  ;;  %1487 = vmatprep.mubr.msk.f32.mxu0 %vm499_vm2, %v1371_v56  ;;  %v711_v28 = vsel %vm2054_vm10, %v708_v30, %v705_v35  ;;  %v768_v24 = vsel %vm640_vm7, %v1974_v61, %v760_v34 }
 0x1fd   : > { %1488 = vmatmul.mubr.msk.f32.vlgmr.msra.gmra.mxu0 %vm499_vm2, %v1372_v11  ;;  %v1616_v41 = vpop.eup %1615  ;;  %v759_v42 = vadd.f32 %v711_v28, %v631_v16  ;;  %v738_v43 = vsel %vm737_vm12, %v735_v0, %v732_v38  ;;  %v1374_v18 = vadd.f32 -0.6931472, %v768_v24  ;;  %v1379_v16 = vld [vmem:[%s2339_s1 + $0x72] ss:$0 sm:$0xff] }
 0x1fe   : > { %v762_v45 = vadd.f32 %v738_v43, %v634_v4  ;;  %v723_v46 = vmul.f32 0.6931472, %v1616_v41 }
 0x1ff   : > { %v767_v61 = vsel %vm639_vm9, %v1977_v59, %v759_v42  ;;  %784 = vst.msk [vmem:[%s2044_s10 + $0x18] sm:$0xff] %vm499_vm2, %v1374_v18 }
 0x200   : > { %v729_v55 = vsel %vm728_vm13, %v726_v47, %v723_v46  ;;  %v1373_v58 = vadd.f32 -0.6931472, %v767_v61  ;;  %v770_v44 = vsel %vm642_vm11, %v1979_v3, %v762_v45 }
 0x201   : > { %v761_v31 = vadd.f32 %v729_v55, %v633_v40  ;;  %v1376_v1 = vadd.f32 -0.6931472, %v770_v44 }
 0x202   : > { %v1618_v50 = vpop.eup %1617  ;;  %783 = vst.msk [vmem:[%s2044_s10 + $0x10] sm:$0xff] %vm499_vm2, %v1373_v58  ;;  %1490 = vmatprep.mubr.msk.f32.mxu0 %vm499_vm2, %v1373_v58 }
 0x203   : > { %v750_v57 = vmul.f32 0.6931472, %v1618_v50  ;;  %1491 = vmatmul.mubr.msk.f32.gmra.mxu0 %vm499_vm2, %v1374_v18  ;;  %v769_v5 = vsel %vm641_vm15, %v1983_v10, %v761_v31  ;;  %786 = vst.msk [vmem:[%s2044_s10 + $0x28] sm:$0xff] %vm499_vm2, %v1376_v1 }
 0x204   : > { %v1620_v60 = vpop.eup %1619  ;;  %v1375_v7 = vadd.f32 -0.6931472, %v769_v5 }
 0x205   : > { %v756_v59 = vsel %vm755_vm14, %v753_v51, %v750_v57  ;;  %v741_v2 = vmul.f32 0.6931472, %v1620_v60 }
 0x206   : > { %v764_v3 = vadd.f32 %v756_v59, %v636_v62  ;;  %785 = vst.msk [vmem:[%s2044_s10 + $0x20] sm:$0xff] %vm499_vm2, %v1375_v7  ;;  %1493 = vmatprep.mubr.msk.f32.mxu0 %vm499_vm2, %v1375_v7 }
 0x207   : > { %v747_v54 = vsel %vm746_vm0, %v744_v63, %v741_v2  ;;  %1494 = vmatmul.mubr.msk.f32.gmra.mxu0 %vm499_vm2, %v1376_v1 }
 0x208   : > { %v763_v8 = vadd.f32 %v747_v54, %v635_v17  ;;  %v772_v9 = vsel %vm644_vm1, %v1985_v13, %v764_v3  ;;  %v1715_v13 = vmov 0.0  }
 0x209   : > { %v1378_v11 = vadd.f32 -0.6931472, %v772_v9  ;;  %1499 = vmatprep.subr.mxu1 %v1715_v13  ;;  %1507 = vmatprep.mubr.msk.f32.mxu1 %vm1716_vm4, %v1715_v13 }
 0x20a   : > { %v771_v10 = vsel %vm643_vm3, %v1989_v26, %v763_v8  ;;  %1500 = vmatpush3.msra.mxu1 %v204_v14  ;;  %v203_v26 = vld [vmem:[%s2339_s1 + $0x60] sm:$0xff] }
 0x20b   : > { %v1377_v12 = vadd.f32 -0.6931472, %v771_v10  ;;  %788 = vst.msk [vmem:[%s2044_s10 + $0x38] sm:$0xff] %vm499_vm2, %v1378_v11  ;;  %1501 = vmatprep.subr.mxu1 %v1715_v13 }
 0x20c   : > { %1502 = vmatpush3.msra.mxu1 %v203_v26 }
 0x20d   : > { %787 = vst.msk [vmem:[%s2044_s10 + $0x30] sm:$0xff] %vm499_vm2, %v1377_v12  ;;  %1496 = vmatprep.mubr.msk.f32.mxu0 %vm499_vm2, %v1377_v12  ;;  %1503 = vmatprep.subr.mxu1 %v1715_v13  ;;  %s1657_s10 = sshll.u32 %s1717_s17, 4  ;;  %s1658_s10 = int_to_ptr.vmem [resolvable:$false] %s1657_s10 }
 0x20e   : > { %1497 = vmatmul.mubr.msk.f32.gmra.mxu0 %vm499_vm2, %v1378_v11  ;;  %1504 = vmatpush3.msra.mxu1 %v202_v15  ;;  %s1659_s19 = scalar_lea.vmem %s1658_s10, 2048  ;;  %p1660_p0 = scmp.lt.s32.totalorder %s2286_s4, %s1658_s10 }
 0x20f   : > { %1505 = vmatprep.subr.mxu1 %v1715_v13  ;;  %p1661_p1 = scmp.lt.s32.totalorder %s1659_s19, %s1653_s11 }
 0x210   : > { %1506 = vmatpush3.msra.mxu1 %v201_v23 }
 0x211   : > { %p1662_p2 = por %p1661_p1, %p1660_p0 }
 0x213   : > { %p1663_p3 = pnand %p1662_p2, %p1656_p13 }
 0x2bd   : > { %v1489_v20 = vpop.f32.mrf.mxu0 }
 0x2be   : > { %v2131_v49 = vadd.f32 %v1489_v20, %v1379_v16 }
 0x2bf   : > { %v883_v25 = vpop.f32.mrf.mxu0 }
 0x2c0   : > { %v947_v27 = vand.u32 2147483647, %v2131_v49  ;;  %v2134_v29 = vadd.f32 %v1379_v16, %v883_v25  ;;  %v923_v10 = vmax.f32 %v2131_v49, 0.0  ;;  %vm931_vm5 = vcmp.ne.f32.partialorder %v2131_v49, %v2131_v49 }
 0x2c2   : > { %v955_v56 = vsub.f32 0.0, %v947_v27  ;;  %v946_v4 = vand.u32 2147483647, %v2134_v29  ;;  %v922_v23 = vmax.f32 %v2134_v29, 0.0  ;;  %vm930_vm7 = vcmp.ne.f32.partialorder %v2134_v29, %v2134_v29 }
 0x2c3   : > { %v1492_v30 = vpop.f32.mrf.mxu0 }
 0x2c4   : > { %v964_v6 = vmul.f32 1.442695, %v955_v56  ;;  %v954_v52 = vsub.f32 0.0, %v946_v4  ;;  %v2137_v21 = vadd.f32 %v1492_v30, %v1379_v16 }
 0x2c5   : > { %v893_v32 = vpop.f32.mrf.mxu0 }
 0x2c6   : > { %1621 = vpow2.f32 %v964_v6  ;;  %v962_v22 = vmul.f32 1.442695, %v954_v52  ;;  %v949_v34 = vand.u32 2147483647, %v2137_v21  ;;  %v2140_v35 = vadd.f32 %v1379_v16, %v893_v32 }
 0x2c7   : > { %v1495_v36 = vpop.f32.mrf.mxu0  ;;  %v925_v32 = vmax.f32 %v2137_v21, 0.0  ;;  %vm933_vm9 = vcmp.ne.f32.partialorder %v2137_v21, %v2137_v21 }
 0x2c8   : > { %1623 = vpow2.f32 %v962_v22  ;;  %v957_v37 = vsub.f32 0.0, %v949_v34  ;;  %v948_v38 = vand.u32 2147483647, %v2140_v35  ;;  %v2143_v0 = vadd.f32 %v1495_v36, %v1379_v16 }
 0x2c9   : > { %v903_v39 = vpop.f32.mrf.mxu0  ;;  %v924_v34 = vmax.f32 %v2140_v35, 0.0  ;;  %vm932_vm10 = vcmp.ne.f32.partialorder %v2140_v35, %v2140_v35 }
 0x2ca   : > { %v968_v19 = vmul.f32 1.442695, %v957_v37  ;;  %v956_v28 = vsub.f32 0.0, %v948_v38  ;;  %v2145_v40 = vadd.f32 %v1379_v16, %v903_v39  ;;  %v951_v24 = vand.u32 2147483647, %v2143_v0 }
 0x2cb   : > { %vm935_vm12 = vcmp.ne.f32.partialorder %v2143_v0, %v2143_v0 }
 0x2cc   : > { %1625 = vpow2.f32 %v968_v19  ;;  %v966_v42 = vmul.f32 1.442695, %v956_v28  ;;  %v959_v43 = vsub.f32 0.0, %v951_v24  ;;  %v950_v33 = vand.u32 2147483647, %v2145_v40 }
 0x2cd   : > { %vm934_vm15 = vcmp.ne.f32.partialorder %v2145_v40, %v2145_v40 }
 0x2ce   : > { %v1498_v41 = vpop.f32.mrf.mxu0  ;;  %1627 = vpow2.f32 %v966_v42  ;;  %v972_v47 = vmul.f32 1.442695, %v959_v43  ;;  %v958_v48 = vsub.f32 0.0, %v950_v33  ;;  %v927_v43 = vmax.f32 %v2143_v0, 0.0 }
 0x2cf   : > { %v2149_v18 = vadd.f32 %v1498_v41, %v1379_v16 }
 0x2d0   : > { %v913_v45 = vpop.f32.mrf.mxu0  ;;  %1629 = vpow2.f32 %v972_v47  ;;  %v970_v57 = vmul.f32 1.442695, %v958_v48  ;;  %v926_v48 = vmax.f32 %v2145_v40, 0.0 }
 0x2d1   : > { %v2151_v46 = vadd.f32 %v1379_v16, %v913_v45  ;;  %v953_v51 = vand.u32 2147483647, %v2149_v18  ;;  %vm937_vm1 = vcmp.ne.f32.partialorder %v2149_v18, %v2149_v18 }
 0x2d3   : > { %v1622_v50 = vpop.eup %1621  ;;  %v952_v53 = vand.u32 2147483647, %v2151_v46  ;;  %v961_v58 = vsub.f32 0.0, %v953_v51 }
 0x2d4   : > { %v987_v61 = vadd.f32 1.0, %v1622_v50  ;;  %v990_v59 = vmul.f32 -0.5, %v1622_v50  ;;  %v993_v7 = vand.u32 2147483647, %v1622_v50 }
 0x2d5   : > { %v1624_v55 = vpop.eup %1623  ;;  %v960_v44 = vsub.f32 0.0, %v952_v53  ;;  %v976_v31 = vmul.f32 1.442695, %v961_v58 }
 0x2d6   : > { %1631 = vlog2.f32 %v987_v61  ;;  %v978_v60 = vadd.f32 1.0, %v1624_v55  ;;  %v981_v3 = vmul.f32 -0.5, %v1624_v55  ;;  %v991_v5 = vadd.f32 1.0, %v990_v59 }
 0x2d7   : > { %1633 = vpow2.f32 %v970_v57  ;;  %v974_v62 = vmul.f32 1.442695, %v960_v44  ;;  %v984_v12 = vand.u32 2147483647, %v1624_v55  ;;  %vm994_vm6 = vcmp.lt.f32.partialorder %v993_v7, 0.0004427343 }
 0x2d8   : > { %1635 = vlog2.f32 %v978_v60  ;;  %v982_v8 = vadd.f32 1.0, %v981_v3  ;;  %v992_v26 = vmul.f32 %v1622_v50, %v991_v5  ;;  %v929_v50 = vmax.f32 %v2149_v18, 0.0 }
 0x2d9   : > { %1637 = vpow2.f32 %v976_v31  ;;  %v2155_v1 = vpop.eup %1625  ;;  %vm985_vm8 = vcmp.lt.f32.partialorder %v984_v12, 0.0004427343 }
 0x2da   : > { %1639 = vpow2.f32 %v974_v62  ;;  %v1005_v2 = vadd.f32 1.0, %v2155_v1  ;;  %v1008_v16 = vmul.f32 -0.5, %v2155_v1  ;;  %v983_v4 = vmul.f32 %v1624_v55, %v982_v8 }
 0x2db   : > { %v2158_v63 = vpop.eup %1627  ;;  %v1011_v24 = vand.u32 2147483647, %v2155_v1 }
 0x2dc   : > { %1641 = vlog2.f32 %v1005_v2  ;;  %v996_v17 = vadd.f32 1.0, %v2158_v63  ;;  %v999_v22 = vmul.f32 -0.5, %v2158_v63  ;;  %v1009_v39 = vadd.f32 1.0, %v1008_v16 }
 0x2dd   : > { %v2161_v54 = vpop.eup %1629  ;;  %v1002_v47 = vand.u32 2147483647, %v2158_v63  ;;  %vm1012_vm11 = vcmp.lt.f32.partialorder %v1011_v24, 0.0004427343 }
 0x2de   : > { %1643 = vlog2.f32 %v996_v17  ;;  %v1023_v9 = vadd.f32 1.0, %v2161_v54  ;;  %v1026_v41 = vmul.f32 -0.5, %v2161_v54  ;;  %v1010_v53 = vmul.f32 %v2155_v1, %v1009_v39 }
 0x2df   : > { %vm1003_vm13 = vcmp.lt.f32.partialorder %v1002_v47, 0.0004427343 }
 0x2e0   : > { %1645 = vlog2.f32 %v1023_v9  ;;  %v1027_v44 = vadd.f32 1.0, %v1026_v41 }
 0x2e2   : > { %v1028_v12 = vmul.f32 %v2161_v54, %v1027_v44 }
 0x2e3   : > { %v1632_v11 = vpop.eup %1631 }
 0x2e4   : > { %v2165_v13 = vpop.eup %1633  ;;  %v989_v14 = vmul.f32 0.6931472, %v1632_v11 }
 0x2e5   : > { %v1636_v15 = vpop.eup %1635  ;;  %v1014_v20 = vadd.f32 1.0, %v2165_v13  ;;  %v1017_v61 = vmul.f32 -0.5, %v2165_v13  ;;  %v1020_v3 = vand.u32 2147483647, %v2165_v13 }
 0x2e6   : > { %v2172_v25 = vpop.eup %1637  ;;  %v995_v27 = vsel %vm994_vm6, %v992_v26, %v989_v14  ;;  %v980_v56 = vmul.f32 0.6931472, %v1636_v15  ;;  %vm1142_vm6 = vcmask 1041409  }
 0x2e7   : > { %v2176_v6 = vpop.eup %1639  ;;  %v1051_v52 = vadd.f32 %v995_v27, %v923_v10  ;;  %1647 = vlog2.f32 %v1014_v20  ;;  %v1041_v36 = vadd.f32 1.0, %v2172_v25  ;;  %v1044_v1 = vmul.f32 -0.5, %v2172_v25 }
 0x2e8   : > { %v986_v30 = vsel %vm985_vm8, %v983_v4, %v980_v56  ;;  %v1032_v19 = vadd.f32 1.0, %v2176_v6  ;;  %v1018_v9 = vadd.f32 1.0, %v1017_v61  ;;  %v1047_v15 = vand.u32 2147483647, %v2172_v25 }
 0x2e9   : > { %v1059_v37 = vsel %vm931_vm5, %v2131_v49, %v1051_v52  ;;  %v1050_v38 = vadd.f32 %v986_v30, %v922_v23  ;;  %1649 = vlog2.f32 %v1041_v36  ;;  %v1000_v49 = vadd.f32 1.0, %v999_v22  ;;  %v1642_v33 = vpop.eup %1641 }
 0x2ea   : > { %v1389_v28 = vadd.f32 -0.6931472, %v1059_v37  ;;  %1651 = vlog2.f32 %v1032_v19  ;;  %v1007_v51 = vmul.f32 0.6931472, %v1642_v33  ;;  %v1045_v26 = vadd.f32 1.0, %v1044_v1 }
 0x2eb   : > { %v1058_v42 = vsel %vm930_vm7, %v2134_v29, %v1050_v38  ;;  %v1029_v29 = vand.u32 2147483647, %v2161_v54  ;;  %v1644_v55 = vpop.eup %1643  ;;  %v1001_v62 = vmul.f32 %v2158_v63, %v1000_v49  ;;  %v1035_v23 = vmul.f32 -0.5, %v2176_v6 }
 0x2ec   : > { %v1388_v45 = vadd.f32 -0.6931472, %v1058_v42  ;;  %v1081_v57 = vsel %vm499_vm2, %v1389_v28, 0.0  ;;  %v1013_v60 = vsel %vm1012_vm11, %v1010_v53, %v1007_v51  ;;  %v998_v31 = vmul.f32 0.6931472, %v1644_v55 }
 0x2ed   : > { %v1053_v2 = vadd.f32 %v1013_v60, %v925_v32  ;;  %v1646_v17 = vpop.eup %1645  ;;  %v1082_v5 = vrot.slane %v1081_v57, 4  ;;  %vm2211_vm14 = vcmp.lt.f32.partialorder %v1029_v29, 0.0004427343  ;;  %vm2230_vm0 = vcmp.lt.f32.partialorder %v1020_v3, 0.0004427343 }
 0x2ee   : > { %v1074_v58 = vsel %vm499_vm2, %v1388_v45, 0.0  ;;  %v1004_v7 = vsel %vm1003_vm13, %v1001_v62, %v998_v31  ;;  %v1025_v10 = vmul.f32 0.6931472, %v1646_v17  ;;  %v1019_v22 = vmul.f32 %v2165_v13, %v1018_v9 }
 0x2ef   : > { %v1075_v59 = vrot.slane %v1074_v58, 4  ;;  %v1061_v63 = vsel %vm933_vm9, %v2137_v21, %v1053_v2  ;;  %v1052_v11 = vadd.f32 %v1004_v7, %v924_v34  ;;  %v1083_v56 = vadd.f32 %v1082_v5, %v1081_v57 }
 0x2f0   : > { %v1391_v14 = vadd.f32 -0.6931472, %v1061_v63  ;;  %v1031_v27 = vsel %vm2211_vm14, %v1028_v12, %v1025_v10  ;;  %v1046_v38 = vmul.f32 %v2172_v25, %v1045_v26  ;;  %vm2241_vm3 = vcmp.lt.f32.partialorder %v1047_v15, 0.0004427343 }
 0x2f1   : > { %v1076_v20 = vadd.f32 %v1075_v59, %v1074_v58  ;;  %v1060_v21 = vsel %vm932_vm10, %v2140_v35, %v1052_v11  ;;  %v1055_v32 = vadd.f32 %v1031_v27, %v927_v43  ;;  %v1038_v35 = vand.u32 2147483647, %v2176_v6 }
 0x2f2   : > { %v1095_v4 = vsel %vm499_vm2, %v1391_v14, 0.0  ;;  %v1390_v52 = vadd.f32 -0.6931472, %v1060_v21  ;;  %v1036_v19 = vadd.f32 1.0, %v1035_v23  ;;  %v1084_v49 = vrot.slane %v1083_v56, 2 }
 0x2f3   : > { %v1096_v30 = vrot.slane %v1095_v4, 4  ;;  %v1077_v13 = vrot.slane %v1076_v20, 2  ;;  %v1063_v41 = vsel %vm935_vm12, %v2143_v0, %v1055_v32  ;;  %vm2251_vm4 = vcmp.lt.f32.partialorder %v1038_v35, 0.0004427343 }
 0x2f4   : > { %v1648_v16 = vpop.eup %1647  ;;  %v1088_v37 = vsel %vm499_vm2, %v1390_v52, 0.0  ;;  %v1393_v43 = vadd.f32 -0.6931472, %v1063_v41  ;;  %v1085_v60 = vadd.f32 %v1084_v49, %v1083_v56  ;;  %v928_v62 = vmax.f32 %v2151_v46, 0.0 }
 0x2f5   : > { %v1016_v34 = vmul.f32 0.6931472, %v1648_v16  ;;  %v1089_v24 = vrot.slane %v1088_v37, 4  ;;  %v1097_v45 = vadd.f32 %v1096_v30, %v1095_v4  ;;  %v1078_v55 = vadd.f32 %v1077_v13, %v1076_v20 }
 0x2f6   : > { %v1650_v36 = vpop.eup %1649  ;;  %v1109_v29 = vsel %vm499_vm2, %v1393_v43, 0.0  ;;  %vm936_vm5 = vcmp.ne.f32.partialorder %v2151_v46, %v2151_v46  ;;  %vm1144_vm7 = vcmask 1042434   ;;  %vm1146_vm8 = vcmask 1043459  }
 0x2f7   : > { %v1652_v28 = vpop.eup %1651  ;;  %v1022_v42 = vsel %vm2230_vm0, %v1019_v22, %v1016_v34  ;;  %v1043_v25 = vmul.f32 0.6931472, %v1650_v36  ;;  %v1090_v47 = vadd.f32 %v1089_v24, %v1088_v37  ;;  %v1110_v58 = vrot.slane %v1109_v29, 4 }
 0x2f8   : > { %v1054_v33 = vadd.f32 %v1022_v42, %v926_v48  ;;  %v1034_v51 = vmul.f32 0.6931472, %v1652_v28  ;;  %v1037_v48 = vmul.f32 %v2176_v6, %v1036_v19  ;;  %v1098_v59 = vrot.slane %v1097_v45, 2 }
 0x2f9   : > { %v1049_v61 = vsel %vm2241_vm3, %v1046_v38, %v1043_v25  ;;  %v1091_v57 = vrot.slane %v1090_v47, 2  ;;  %v1111_v2 = vadd.f32 %v1110_v58, %v1109_v29  ;;  %v1079_v7 = vrot.slane %v1078_v55, 1 }
 0x2fa   : > { %v1062_v0 = vsel %vm934_vm15, %v2145_v40, %v1054_v33  ;;  %v1057_v31 = vadd.f32 %v1049_v61, %v929_v50  ;;  %v1040_v1 = vsel %vm2251_vm4, %v1037_v48, %v1034_v51  ;;  %v1086_v50 = vrot.slane %v1085_v60, 1 }
 0x2fb   : > { %v1392_v44 = vadd.f32 -0.6931472, %v1062_v0  ;;  %v1092_v40 = vadd.f32 %v1091_v57, %v1090_v47  ;;  %v1056_v5 = vadd.f32 %v1040_v1, %v928_v62  ;;  %v1099_v10 = vadd.f32 %v1098_v59, %v1097_v45 }
 0x2fc   : > { %v1065_v6 = vsel %vm937_vm1, %v2149_v18, %v1057_v31  ;;  %v1112_v12 = vrot.slane %v1111_v2, 2  ;;  %v1080_v16 = vadd.f32 %v1079_v7, %v1078_v55  ;;  %v1087_v56 = vadd.f32 %v1086_v50, %v1085_v60 }
 0x2fd   : > { %v1102_v3 = vsel %vm499_vm2, %v1392_v44, 0.0  ;;  %v1395_v8 = vadd.f32 -0.6931472, %v1065_v6  ;;  %v1093_v9 = vrot.slane %v1092_v40, 1  ;;  %v1064_v11 = vsel %vm936_vm5, %v2151_v46, %v1056_v5 }
 0x2fe   : > { %v1103_v17 = vrot.slane %v1102_v3, 4  ;;  %v1394_v26 = vadd.f32 -0.6931472, %v1064_v11  ;;  %v1100_v4 = vrot.slane %v1099_v10, 1  ;;  %v1113_v52 = vadd.f32 %v1112_v12, %v1111_v2 }
 0x2ff   : > { %v1123_v14 = vsel %vm499_vm2, %v1395_v8, 0.0  ;;  %v1094_v20 = vadd.f32 %v1093_v9, %v1092_v40  ;;  %v1143_v32 = vsel %vm1142_vm6, %v1087_v56, %v1080_v16  ;;  %vm1148_vm9 = vcmask 1044484  }
 0x300   : > { %v1104_v63 = vadd.f32 %v1103_v17, %v1102_v3  ;;  %v1124_v23 = vrot.slane %v1123_v14, 4  ;;  %v1116_v18 = vsel %vm499_vm2, %v1394_v26, 0.0  ;;  %v1101_v38 = vadd.f32 %v1100_v4, %v1099_v10 }
 0x301   : > { %v1117_v54 = vrot.slane %v1116_v18, 4  ;;  %v1145_v37 = vsel %vm1144_vm7, %v1094_v20, %v1143_v32  ;;  %v1114_v39 = vrot.slane %v1113_v52, 1  ;;  %vm1150_vm10 = vcmask 1045509  }
 0x302   : > { %v1105_v15 = vrot.slane %v1104_v63, 2  ;;  %v1125_v27 = vadd.f32 %v1124_v23, %v1123_v14  ;;  %v1147_v13 = vsel %vm1146_vm8, %v1101_v38, %v1145_v37  ;;  %vm1152_vm11 = vcmask 1046534  }
 0x303   : > { %v1118_v30 = vadd.f32 %v1117_v54, %v1116_v18  ;;  %v1115_v42 = vadd.f32 %v1114_v39, %v1113_v52  ;;  %vm1154_vm12 = vcmask 1047559  }
 0x304   : > { %v1106_v21 = vadd.f32 %v1105_v15, %v1104_v63  ;;  %v1126_v22 = vrot.slane %v1125_v27, 2 }
 0x305   : > { %v1119_v36 = vrot.slane %v1118_v30, 2 }
 0x306   : > { %v1107_v46 = vrot.slane %v1106_v21, 1  ;;  %v1127_v35 = vadd.f32 %v1126_v22, %v1125_v27 }
 0x307   : > { %v1120_v19 = vadd.f32 %v1119_v36, %v1118_v30 }
 0x308   : > { %v1108_v34 = vadd.f32 %v1107_v46, %v1106_v21  ;;  %v1128_v28 = vrot.slane %v1127_v35, 1 }
 0x309   : > { %v1121_v24 = vrot.slane %v1120_v19, 1 }
 0x30a   : > { %v1149_v41 = vsel %vm1148_vm9, %v1108_v34, %v1147_v13  ;;  %v1129_v43 = vadd.f32 %v1128_v28, %v1127_v35 }
 0x30b   : > { %v1122_v49 = vadd.f32 %v1121_v24, %v1120_v19  ;;  %v1151_v33 = vsel %vm1150_vm10, %v1115_v42, %v1149_v41 }
 0x30d   : > { %v1153_v25 = vsel %vm1152_vm11, %v1122_v49, %v1151_v33 }
 0x30e   : > { %v1155_v45 = vsel %vm1154_vm12, %v1129_v43, %v1153_v25 }
 0x30f   : > { %1508 = vmatmul.mubr.msk.f32.vlgmr.msra.gmra.mxu1 %vm499_vm2, %v1155_v45 }
 0x310   : > { %1666 = shalt.err (!%p1663_p3)
}
 0x311   : > { %s1667_s8 = scalar_lea.hbm %s2284_s7, 1024  ;;  %s1671_s25 = scalar_lea.hbm %s2340_s2, 2048 }
 0x312   : > { %p1668_p4 = scmp.ne.s32.totalorder %s2284_s7, %s1667_s8  ;;  %p1672_p9 = scmp.lt.s32.totalorder %s2284_s7, %s2340_s2 }
 0x313   : > { %p1673_p10 = scmp.lt.s32.totalorder %s1671_s25, %s1667_s8 }
 0x314   : > { %p1669_p7 = pnand %p1668_p4, %p1778_p5 }
 0x315   : > { %p1674_p11 = por %p1673_p10, %p1672_p9 }
 0x316   : > { %p1670_p8 = pneg %p1669_p7 }
 0x318   : > { %p1675_p12 = pnand %p1674_p11, %p1670_p8 }
 0x31a   : > { %1678 = shalt.err (!%p1675_p12)
}
 0x31b   : > { %s1718_s28 = smov 128   ;;  %s1719_s29 = smov 8   ;;  %v1396_v47 = vld [vmem:[%s2339_s1 + $0x73] ss:$0 sm:$0xff]  ;;  %vm1228_vm2 = vcmask 15360  }
 0x31c   : > { %1514 = dma.vmem_to_hbm [thread:$0]  (%p1778_p5), %s2286_s4, 1024, %s2284_s7, %s2290_s9, %s1718_s28, %s1718_s28, %s1719_s29  }
 0x31d   : > { %p179_p13 = scmp.lt.s32.totalorder %s1761_s16, 1 }
 0x31f   : > { %s2371_s16 = smov (!%p179_p13, %s1761_s16), 1 }
 0x320   : > { %s1344_s30 = sshll.u32 %s2371_s16, 3 }
 0x321   : > { %s182_s10 = scalar_lea.vmem %s2341_s3, %s1344_s30 }
 0x3cf   : > { %v1224_v51 = vpop.f32.mrf.mxu1 }
 0x3d0   : > { %v1225_v53 = vadd.f32 %v1396_v47, %v1224_v51 }
 0x3d1   : > { %v1509_v29 = vpop.f32.mrf.mxu1 }
 0x3d2   : > { %1229 = vst.msk [vmem:[%s182_s10] sm:$0xff] %vm1228_vm2, %v1225_v53 }
 0x3d3 PF: > { %p1520_p5 = scmp.ge.s32.totalorder %s1713_s15, 2  ;;  %s1266_s22 = sand.u32 1, %s1701_s12  }
 0x3d4   : > { %s1267_s16 = scalar_lea.sflag [#allocation3], %s1266_s22 }
 0x3d5   : > { %p1517_p0 = pnand %p1520_p5, %p1782_p6 }
 0x3d7   : > { %p1518_p1 = pneg %p1517_p0 }
 0x3d9   : > { %1696 = dma.done.wait (%p1518_p1), %s1267_s16, 1024  }
 0x3da   : > { %1698 = vsyncadd (%p1518_p1), %s1267_s16, 4294966272  ;;  %p14_p2 = scmp.ge.s32.totalorder %s1765_s18, 4   ;;  %s2364_s12 = smov %s1705_s13 }
 0x3db   : > { %s2365_s13 = smov %s1709_s14  ;;  %s2366_s14 = smov %s1776_s21 }
 0x3dc   : > { %s2367_s15 = smov %s1765_s18  ;;  %16 = sbr.rel (!%p14_p2) target bundleno = 3 (0x3), region = 75 }
 0x3e1   :  { %1279 = vsyncpa [#allocation3], 1 }
 0x3e2   :  { %1281 = vsyncpa [#allocation3 + $0x1], 1 }

</bundles_post_ra>
